<compile_context>
chip_gen: v7x
topology: tpu7x:2x2x1
jax: 0.10.0
libtpu: 0.0.40
codegen_flags: <defaults>
</compile_context>

<pallas_src>
import jax
import jax.numpy as jnp
from jax.experimental import pallas as pl
from jax.experimental.pallas import tpu as pltpu


def _round_up(x, m):
    return ((x + m - 1) // m) * m


def _net_gpu_kernel(x_ref, w1_ref, w2_ref, w3_ref, w4_ref, b_ref, o_ref):
    """One batch tile of the 4-layer MLP.

    The min-max "encode" has been folded into (w1, b[0]) by the wrapper, so
    the kernel body is just 4 MXU matmuls + 3 tanh-form sigmoids.
    """
    b = b_ref[...]                                   # (4, P) stacked biases

    def sigmoid(z):                                  # 1/(1+e^-z) == 0.5*(1+tanh(z/2))
        return 0.5 * (1.0 + jnp.tanh(0.5 * z))

    x = x_ref[...]
    h = sigmoid(jnp.dot(x, w1_ref[...], preferred_element_type=jnp.float32) + b[0:1, :])
    h = sigmoid(jnp.dot(h, w2_ref[...], preferred_element_type=jnp.float32) + b[1:2, :])
    h = sigmoid(jnp.dot(h, w3_ref[...], preferred_element_type=jnp.float32) + b[2:3, :])
    y = jnp.dot(h, w4_ref[...], preferred_element_type=jnp.float32) + b[3:4, :]

    # Store only the D_out valid columns: a few masked vst.msk stores are far
    # cheaper than writing (and later re-reading) a 128-wide padded slab.
    o_ref[...] = y[:, : o_ref.shape[1]].astype(o_ref.dtype)


def prepare_params(params):
    """One-time prep (outside the hot path): transpose nn.Linear (out, in)
    weights to (in, out) and zero-pad hidden dims to a lane-dense multiple of
    128 so every matmul is unmasked on the MXU."""
    H, D_in = params["w1"].shape
    D_out = params["w4"].shape[0]
    P = _round_up(max(H, D_out), 128)

    def pad_wt(w, rows, cols):
        wt = jnp.asarray(w, jnp.float32).T                 # (in, out)
        return jnp.pad(wt, ((0, rows - wt.shape[0]), (0, cols - wt.shape[1])))

    def pad_b(b):
        b = jnp.asarray(b, jnp.float32)
        return jnp.pad(b, (0, P - b.shape[0]))

    return dict(
        w1=pad_wt(params["w1"], D_in, P),
        w2=pad_wt(params["w2"], P, P),
        w3=pad_wt(params["w3"], P, P),
        w4=pad_wt(params["w4"], P, P),
        b=jnp.stack([pad_b(params["b1"]), pad_b(params["b2"]),
                     pad_b(params["b3"]), pad_b(params["b4"])]),   # (4, P)
        D_in=D_in, D_out=D_out, P=P,
    )


def net_gpu_forward(x, prep, *, tm=1024):
    """x: (N, D_in) float32. prep: output of prepare_params()."""
    x = jnp.asarray(x, jnp.float32)
    N, D_in = x.shape
    assert D_in == prep["D_in"]
    D_out, P = prep["D_out"], prep["P"]

    # Full-batch min/max stats (the reference encode()).  min and max over the
    # same operand fuse into a single multi-output reduction pass in XLA.
    xmin = jnp.min(x, axis=0, keepdims=True)
    xmax = jnp.max(x, axis=0, keepdims=True)
    inv = 1.0 / (xmax - xmin)   # NOTE: same constant-feature inf/NaN hazard as the reference

    # Fold the encode into layer 1:
    #   ((x - xmin) * inv) @ W1 + b1  ==  x @ (W1 * inv^T) + (b1 - (xmin*inv) @ W1)
    w1f = prep["w1"] * inv.reshape(D_in, 1)                  # (D_in, P)
    b1f = prep["b"][0:1, :] - (xmin * inv) @ prep["w1"]      # (1, P)
    b = jnp.concatenate([b1f, prep["b"][1:, :]], axis=0)     # (4, P)

    # Batch tile: large enough to amortize the ~0.35 us/grid-step overhead,
    # 8-aligned, and capped so the "parallel" batch axis has >= 2 steps
    # (shards across both v7x TensorCores; no-op on v5e/v6e).
    TM = max(8, min(tm, _round_up(pl.cdiv(N, 2), 8)))
    grid = (pl.cdiv(N, TM),)   # ragged last tile: OOB rows unused, stores masked

    const = lambda shape: pl.BlockSpec(shape, lambda i: (0, 0))

    return pl.pallas_call(
        _net_gpu_kernel,
        out_shape=jax.ShapeDtypeStruct((N, D_out), jnp.float32),
        grid=grid,
        in_specs=[
            pl.BlockSpec((TM, D_in), lambda i: (i, 0)),   # x tile (pipelined)
            const((D_in, P)),                             # w1 (encode folded in)
            const((P, P)),                                # w2  (VMEM-resident)
            const((P, P)),                                # w3
            const((P, P)),                                # w4
            const((4, P)),                                # stacked biases
        ],
        out_specs=pl.BlockSpec((TM, D_out), lambda i: (i, 0)),
        compiler_params=pltpu.CompilerParams(
            dimension_semantics=("parallel",)),
    )(x, w1f, prep["w2"], prep["w3"], prep["w4"], b)


def init_params(key, D_in, H, D_out):
    """Deterministic synthetic init mimicking nn.Linear shapes (out, in)."""
    ks = jax.random.split(key, 8)

    def lin(kw, kb, fan_in, fan_out):
        bound = 1.0 / jnp.sqrt(fan_in)
        w = jax.random.uniform(kw, (fan_out, fan_in), jnp.float32, -bound, bound)
        b = jax.random.uniform(kb, (fan_out,), jnp.float32, -bound, bound)
        return w, b

    w1, b1 = lin(ks[0], ks[1], D_in, H)
    w2, b2 = lin(ks[2], ks[3], H, H)
    w3, b3 = lin(ks[4], ks[5], H, H)
    w4, b4 = lin(ks[6], ks[7], H, D_out)
    return dict(w1=w1, b1=b1, w2=w2, b2=b2, w3=w3, b3=b3, w4=w4, b4=b4)


def reference_forward(x, params):
    xmin = jnp.min(x, axis=0, keepdims=True)
    xmax = jnp.max(x, axis=0, keepdims=True)
    xn = (x - xmin) / (xmax - xmin)
    h1 = jax.nn.sigmoid(xn @ params["w1"].T + params["b1"])
    h2 = jax.nn.sigmoid(h1 @ params["w2"].T + params["b2"])
    h3 = jax.nn.sigmoid(h2 @ params["w3"].T + params["b3"])
    return h3 @ params["w4"].T + params["b4"]


if __name__ == "__main__":
    # Small shapes consistent with the module; N=12 deliberately exercises the
    # ragged last batch tile (TM=8 -> 2 grid steps, second one partial).
    N, D_in, H, D_out = 12, 32, 32, 16
    key = jax.random.PRNGKey(0)
    kx, kp = jax.random.split(key)
    x = jax.random.normal(kx, (N, D_in), jnp.float32)
    params = init_params(kp, D_in, H, D_out)

    prep = prepare_params(params)          # one-time weight prep (transpose+pad)
    y = net_gpu_forward(x, prep)
    y = jax.block_until_ready(y)

    y_ref = reference_forward(x, params)
    assert y.shape == (N, D_out)
    # tanh-form sigmoid + encode fold introduce ~1e-6-level f32 associativity
    # deltas vs. the reference; 2e-5 keeps a safe margin.
    assert jnp.allclose(y, y_ref, atol=2e-5, rtol=2e-5)
    print("KERNEL_OK")
</pallas_src>

<mosaic_0001>
module attributes {stable_mosaic.version = 11 : i64} {
  func.func @_net_gpu_kernel(%arg0: i32, %arg1: memref<8x32xf32, #tpu.memory_space<vmem>>, %arg2: memref<32x128xf32, #tpu.memory_space<vmem>>, %arg3: memref<128x128xf32, #tpu.memory_space<vmem>>, %arg4: memref<128x128xf32, #tpu.memory_space<vmem>>, %arg5: memref<128x128xf32, #tpu.memory_space<vmem>>, %arg6: memref<4x128xf32, #tpu.memory_space<vmem>>, %arg7: memref<8x16xf32, #tpu.memory_space<vmem>>) attributes {dimension_semantics = [#tpu.dimension_semantics<parallel>], iteration_bounds = array<i64: 2>, scalar_prefetch = 0 : i64, scratch_operands = 0 : i64, tpu.core_type = #tpu.core_type<tc>, window_params = [{transform_indices = @transform_0, window_bounds = array<i64: 8, 32>}, {pipeline_mode = #tpu.pipeline_mode<synchronous>, transform_indices = @transform_1, window_bounds = array<i64: 32, 128>}, {pipeline_mode = #tpu.pipeline_mode<synchronous>, transform_indices = @transform_2, window_bounds = array<i64: 128, 128>}, {pipeline_mode = #tpu.pipeline_mode<synchronous>, transform_indices = @transform_3, window_bounds = array<i64: 128, 128>}, {pipeline_mode = #tpu.pipeline_mode<synchronous>, transform_indices = @transform_4, window_bounds = array<i64: 128, 128>}, {pipeline_mode = #tpu.pipeline_mode<synchronous>, transform_indices = @transform_5, window_bounds = array<i64: 4, 128>}, {transform_indices = @transform_6, window_bounds = array<i64: 8, 16>}]} {
    %c0 = arith.constant 0 : index
    %c0_0 = arith.constant 0 : index
    %0 = vector.load %arg6[%c0, %c0_0] : memref<4x128xf32, #tpu.memory_space<vmem>>, vector<4x128xf32>
    %c0_1 = arith.constant 0 : index
    %c0_2 = arith.constant 0 : index
    %1 = vector.load %arg1[%c0_1, %c0_2] : memref<8x32xf32, #tpu.memory_space<vmem>>, vector<8x32xf32>
    %c0_3 = arith.constant 0 : index
    %c0_4 = arith.constant 0 : index
    %2 = vector.load %arg2[%c0_3, %c0_4] : memref<32x128xf32, #tpu.memory_space<vmem>>, vector<32x128xf32>
    %cst = arith.constant dense<0.000000e+00> : vector<8x128xf32>
    %3 = tpu.matmul %1, %2, %cst {dimension_numbers = #tpu.dot_dimension_numbers<[1], [0], [0], [1], [0, 0, 1, 1], [], []>} : vector<8x32xf32>, vector<32x128xf32>, vector<8x128xf32> -> vector<8x128xf32>
    %4 = vector.extract_strided_slice %0 {offsets = [0, 0], sizes = [1, 128], strides = [1, 1]} : vector<4x128xf32> to vector<1x128xf32>
    %5 = vector.broadcast %4 : vector<1x128xf32> to vector<8x128xf32>
    %6 = arith.addf %3, %5 : vector<8x128xf32>
    %cst_5 = arith.constant 5.000000e-01 : f32
    %7 = vector.broadcast %cst_5 : f32 to vector<8x128xf32>
    %8 = arith.mulf %7, %6 : vector<8x128xf32>
    %9 = math.tanh %8 : vector<8x128xf32>
    %cst_6 = arith.constant 1.000000e+00 : f32
    %10 = vector.broadcast %cst_6 : f32 to vector<8x128xf32>
    %11 = arith.addf %10, %9 : vector<8x128xf32>
    %cst_7 = arith.constant 5.000000e-01 : f32
    %12 = vector.broadcast %cst_7 : f32 to vector<8x128xf32>
    %13 = arith.mulf %12, %11 : vector<8x128xf32>
    %c0_8 = arith.constant 0 : index
    %c0_9 = arith.constant 0 : index
    %14 = vector.load %arg3[%c0_8, %c0_9] : memref<128x128xf32, #tpu.memory_space<vmem>>, vector<128x128xf32>
    %cst_10 = arith.constant dense<0.000000e+00> : vector<8x128xf32>
    %15 = tpu.matmul %13, %14, %cst_10 {dimension_numbers = #tpu.dot_dimension_numbers<[1], [0], [0], [1], [0, 0, 1, 1], [], []>} : vector<8x128xf32>, vector<128x128xf32>, vector<8x128xf32> -> vector<8x128xf32>
    %16 = vector.extract_strided_slice %0 {offsets = [1, 0], sizes = [1, 128], strides = [1, 1]} : vector<4x128xf32> to vector<1x128xf32>
    %17 = vector.broadcast %16 : vector<1x128xf32> to vector<8x128xf32>
    %18 = arith.addf %15, %17 : vector<8x128xf32>
    %cst_11 = arith.constant 5.000000e-01 : f32
    %19 = vector.broadcast %cst_11 : f32 to vector<8x128xf32>
    %20 = arith.mulf %19, %18 : vector<8x128xf32>
    %21 = math.tanh %20 : vector<8x128xf32>
    %cst_12 = arith.constant 1.000000e+00 : f32
    %22 = vector.broadcast %cst_12 : f32 to vector<8x128xf32>
    %23 = arith.addf %22, %21 : vector<8x128xf32>
    %cst_13 = arith.constant 5.000000e-01 : f32
    %24 = vector.broadcast %cst_13 : f32 to vector<8x128xf32>
    %25 = arith.mulf %24, %23 : vector<8x128xf32>
    %c0_14 = arith.constant 0 : index
    %c0_15 = arith.constant 0 : index
    %26 = vector.load %arg4[%c0_14, %c0_15] : memref<128x128xf32, #tpu.memory_space<vmem>>, vector<128x128xf32>
    %cst_16 = arith.constant dense<0.000000e+00> : vector<8x128xf32>
    %27 = tpu.matmul %25, %26, %cst_16 {dimension_numbers = #tpu.dot_dimension_numbers<[1], [0], [0], [1], [0, 0, 1, 1], [], []>} : vector<8x128xf32>, vector<128x128xf32>, vector<8x128xf32> -> vector<8x128xf32>
    %28 = vector.extract_strided_slice %0 {offsets = [2, 0], sizes = [1, 128], strides = [1, 1]} : vector<4x128xf32> to vector<1x128xf32>
    %29 = vector.broadcast %28 : vector<1x128xf32> to vector<8x128xf32>
    %30 = arith.addf %27, %29 : vector<8x128xf32>
    %cst_17 = arith.constant 5.000000e-01 : f32
    %31 = vector.broadcast %cst_17 : f32 to vector<8x128xf32>
    %32 = arith.mulf %31, %30 : vector<8x128xf32>
    %33 = math.tanh %32 : vector<8x128xf32>
    %cst_18 = arith.constant 1.000000e+00 : f32
    %34 = vector.broadcast %cst_18 : f32 to vector<8x128xf32>
    %35 = arith.addf %34, %33 : vector<8x128xf32>
    %cst_19 = arith.constant 5.000000e-01 : f32
    %36 = vector.broadcast %cst_19 : f32 to vector<8x128xf32>
    %37 = arith.mulf %36, %35 : vector<8x128xf32>
    %c0_20 = arith.constant 0 : index
    %c0_21 = arith.constant 0 : index
    %38 = vector.load %arg5[%c0_20, %c0_21] : memref<128x128xf32, #tpu.memory_space<vmem>>, vector<128x128xf32>
    %cst_22 = arith.constant dense<0.000000e+00> : vector<8x128xf32>
    %39 = tpu.matmul %37, %38, %cst_22 {dimension_numbers = #tpu.dot_dimension_numbers<[1], [0], [0], [1], [0, 0, 1, 1], [], []>} : vector<8x128xf32>, vector<128x128xf32>, vector<8x128xf32> -> vector<8x128xf32>
    %40 = vector.extract_strided_slice %0 {offsets = [3, 0], sizes = [1, 128], strides = [1, 1]} : vector<4x128xf32> to vector<1x128xf32>
    %41 = vector.broadcast %40 : vector<1x128xf32> to vector<8x128xf32>
    %42 = arith.addf %39, %41 : vector<8x128xf32>
    %43 = vector.extract_strided_slice %42 {offsets = [0, 0], sizes = [8, 16], strides = [1, 1]} : vector<8x128xf32> to vector<8x16xf32>
    %c0_23 = arith.constant 0 : index
    %c0_24 = arith.constant 0 : index
    %44 = vector.load %arg7[%c0_23, %c0_24] : memref<8x16xf32, #tpu.memory_space<vmem>>, vector<8x16xf32>
    tpu.vector_store %arg7[%c0_23, %c0_24], %43 {strides = array<i32>} : memref<8x16xf32, #tpu.memory_space<vmem>>, vector<8x16xf32>,
    return
  }
  func.func @transform_0(%arg0: i32) -> (i32, i32) {
    %c0_i32 = arith.constant 0 : i32
    %c0_i32_0 = arith.constant 0 : i32
    return %arg0, %c0_i32 : i32, i32
  }
  func.func @transform_1(%arg0: i32) -> (i32, i32) {
    %c0_i32 = arith.constant 0 : i32
    %c0_i32_0 = arith.constant 0 : i32
    %c0_i32_1 = arith.constant 0 : i32
    return %c0_i32, %c0_i32_0 : i32, i32
  }
  func.func @transform_2(%arg0: i32) -> (i32, i32) {
    %c0_i32 = arith.constant 0 : i32
    %c0_i32_0 = arith.constant 0 : i32
    %c0_i32_1 = arith.constant 0 : i32
    return %c0_i32, %c0_i32_0 : i32, i32
  }
  func.func @transform_3(%arg0: i32) -> (i32, i32) {
    %c0_i32 = arith.constant 0 : i32
    %c0_i32_0 = arith.constant 0 : i32
    %c0_i32_1 = arith.constant 0 : i32
    return %c0_i32, %c0_i32_0 : i32, i32
  }
  func.func @transform_4(%arg0: i32) -> (i32, i32) {
    %c0_i32 = arith.constant 0 : i32
    %c0_i32_0 = arith.constant 0 : i32
    %c0_i32_1 = arith.constant 0 : i32
    return %c0_i32, %c0_i32_0 : i32, i32
  }
  func.func @transform_5(%arg0: i32) -> (i32, i32) {
    %c0_i32 = arith.constant 0 : i32
    %c0_i32_0 = arith.constant 0 : i32
    %c0_i32_1 = arith.constant 0 : i32
    return %c0_i32, %c0_i32_0 : i32, i32
  }
  func.func @transform_6(%arg0: i32) -> (i32, i32) {
    %c0_i32 = arith.constant 0 : i32
    %c0_i32_0 = arith.constant 0 : i32
    return %arg0, %c0_i32 : i32, i32
  }
}

</mosaic_0001>

<bundles_post_ra>
// kernel: tpu_custom_call.1
= control target key start
LH: loop header
LB: loop body
LE: loop exit
PB: predicated region body
PF: predicated region fallthrough
CT: control target
= control target key end

     0   :  { %11 = vsyncpa [#allocation3], 0  ;;  %s1796_s0 = inlined_call_operand.hbm [shape: f32[12,32], index: 0, kind: input, shape index: {}]   ;;  %s1797_s1 = inlined_call_operand.hbm [shape: f32[32,128], index: 1, kind: input, shape index: {}]   ;;  %s1798_s2 = inlined_call_operand.hbm [shape: f32[128,128], index: 2, kind: input, shape index: {}]   ;;  %s1799_s3 = inlined_call_operand.hbm [shape: f32[128,128], index: 3, kind: input, shape index: {}]   ;;  %s1800_s4 = inlined_call_operand.hbm [shape: f32[128,128], index: 4, kind: input, shape index: {}]   ;;  %s1801_s5 = inlined_call_operand.vmem [shape: f32[4,128], index: 5, kind: input, shape index: {}]   ;;  %s1802_s6 = inlined_call_operand.hbm [shape: f32[12,16], index: 6, kind: output, shape index: {}]  }
   0x1   :  { %13 = vsyncpa [#allocation3 + $0x1], 0 }
   0x2   :  { %14 = vsyncpa [#allocation6], 0 }
   0x3   :  { %15 = vsyncpa [#allocation9], 0 }
   0x4   :  { %16 = vsyncpa [#allocation4], 0 }
   0x5   :  { %18 = vsyncpa [#allocation4 + $0x1], 0  ;;  %s1448_s21 = smov 0   ;;  %s1450_s22 = smov 0  }
   0x6   :  { %s1452_s23 = smov 0   ;;  %s1454_s24 = smov 0  }
   0x7 LB: > { %s1402_s25 = smov [#allocation5]   ;;  %s1469_s27 = sadd.s32 4294967295, %s1400_s24   ;;  %s1400_s24 = sphi %s1454_s24, %s1826_s24   ;;  %s1396_s23 = sphi %s1452_s23, %s1825_s23   ;;  %s1392_s22 = sphi %s1450_s22, %s1824_s22   ;;  %s1388_s21 = sphi %s1448_s21, %s1823_s21  }
   0x8   : > { %s198_s26 = sshll.u32 %s1402_s25, 4  ;;  %p816_p0 = scmp.ge.s32.totalorder %s1400_s24, 1  ;;  %s1474_s26 = int_to_ptr.vmem [resolvable:$true] %s198_s26 }
   0x9   : > { %p1803_p1 = scmp.eq.s32.totalorder %s1469_s27, 0  ;;  %p186_p2 = scmp.lt.s32.totalorder %s1400_s24, 3 }
   0xa   : > { %s1403_s29 = smov [#allocation8]   ;;  %s1404_s8 = smov [#allocation7]  }
   0xb   : > { %p1476_p3 = pnand %p816_p0, %p186_p2  ;;  %s224_s30 = sshll.u32 %s1403_s29, 4  ;;  %s1489_s30 = int_to_ptr.vmem [resolvable:$true] %s224_s30 }
   0xc   : > { %s211_s9 = sshll.u32 %s1404_s8, 4  ;;  %s1184_s12 = scalar_lea.hbm %s1797_s1, 512  ;;  %s1491_s9 = int_to_ptr.vmem [resolvable:$true] %s211_s9 }
   0xd   : > { %s1806_s28 = scalar_select %p1476_p3, 1, 0 }
   0xe   : > { %p1106_p5 = pneg %p1476_p3  ;;  %p1185_p7 = scmp.ne.s32.totalorder %s1797_s1, %s1184_s12 }
   0xf   : > { %p1191_p11 = scmp.lt.u32.totalorder %s1184_s12, %s1797_s1 }
  0x10   : > { %p1485_p6 = pnand %p1106_p5, %p1803_p1 }
  0x12   : > { %p1501_p8 = pneg %p1485_p6 }
  0x14   : > { %p1187_p9 = pnand %p1501_p8, %p1185_p7 }
  0x16   : > { %p1188_p10 = pneg %p1187_p9 }
  0x18   : > { %p1193_p12 = pnand %p1191_p11, %p1188_p10 }
  0x1a   : > { %1196 = shalt.err (!%p1193_p12)
}
  0x1b   : > { %s1197_s18 = scalar_lea.vmem %s1474_s26, 512  ;;  %p1205_p5 = scmp.lt.s32.totalorder %s1474_s26, %s1474_s26 }
  0x1c   : > { %p1198_p13 = scmp.ne.s32.totalorder %s1474_s26, %s1197_s18  ;;  %p1206_p4 = scmp.lt.s32.totalorder %s1197_s18, %s1197_s18 }
  0x1e   : > { %p1200_p0 = pnand %p1198_p13, %p1501_p8  ;;  %p1207_p7 = por %p1206_p4, %p1205_p5 }
  0x20   : > { %p1201_p2 = pneg %p1200_p0 }
  0x22   : > { %p1208_p9 = pnand %p1207_p7, %p1201_p2 }
  0x24   : > { %1211 = shalt.err (!%p1208_p9)
}
  0x25   : > { %s1405_s19 = smov 128   ;;  %s1406_s20 = smov 8  }
  0x26   : > { %1109 = dma.hbm_to_vmem [thread:$0]  (!%p1485_p6), %s1797_s1, 512, %s1474_s26, [#allocation6], %s1405_s19, %s1405_s19, %s1406_s20  }
  0x27   : > { %s1212_s11 = scalar_lea.hbm %s1799_s3, 2048 }
  0x28   : > { %p1213_p4 = scmp.ne.s32.totalorder %s1799_s3, %s1212_s11  ;;  %p1219_p12 = scmp.lt.u32.totalorder %s1212_s11, %s1799_s3 }
  0x2a   : > { %p1215_p10 = pnand %p1213_p4, %p1501_p8 }
  0x2c   : > { %p1216_p11 = pneg %p1215_p10 }
  0x2e   : > { %p1221_p13 = pnand %p1219_p12, %p1216_p11 }
  0x30   : > { %1224 = shalt.err (!%p1221_p13)
}
  0x31   : > { %s1225_s26 = scalar_lea.vmem %s1489_s30, 2048  ;;  %p1233_p7 = scmp.lt.s32.totalorder %s1489_s30, %s1489_s30 }
  0x32   : > { %p1226_p0 = scmp.ne.s32.totalorder %s1489_s30, %s1225_s26  ;;  %p1234_p9 = scmp.lt.s32.totalorder %s1225_s26, %s1225_s26 }
  0x34   : > { %p1228_p2 = pnand %p1226_p0, %p1501_p8  ;;  %p1235_p4 = por %p1234_p9, %p1233_p7 }
  0x36   : > { %p1229_p5 = pneg %p1228_p2 }
  0x38   : > { %p1236_p10 = pnand %p1235_p4, %p1229_p5 }
  0x3a   : > { %1239 = shalt.err (!%p1236_p10)
}
  0x3b   : > { %1115 = dma.hbm_to_vmem [thread:$0]  (!%p1485_p6), %s1799_s3, 2048, %s1489_s30, [#allocation9], %s1405_s19, %s1405_s19, %s1406_s20  }
  0x3c   : > { %s1240_s8 = scalar_lea.hbm %s1798_s2, 2048 }
  0x3d   : > { %p1241_p11 = scmp.ne.s32.totalorder %s1798_s2, %s1240_s8  ;;  %p1247_p0 = scmp.lt.u32.totalorder %s1240_s8, %s1798_s2 }
  0x3f   : > { %p1243_p12 = pnand %p1241_p11, %p1501_p8 }
  0x41   : > { %p1244_p13 = pneg %p1243_p12 }
  0x43   : > { %p1249_p2 = pnand %p1247_p0, %p1244_p13 }
  0x45   : > { %1252 = shalt.err (!%p1249_p2)
}
  0x46   : > { %s1253_s30 = scalar_lea.vmem %s1491_s9, 2048  ;;  %p1261_p4 = scmp.lt.s32.totalorder %s1491_s9, %s1491_s9 }
  0x47   : > { %p1254_p5 = scmp.ne.s32.totalorder %s1491_s9, %s1253_s30  ;;  %p1262_p10 = scmp.lt.s32.totalorder %s1253_s30, %s1253_s30 }
  0x49   : > { %p1256_p7 = pnand %p1254_p5, %p1501_p8  ;;  %p1263_p11 = por %p1262_p10, %p1261_p4 }
  0x4b   : > { %p1257_p9 = pneg %p1256_p7 }
  0x4d   : > { %p1264_p12 = pnand %p1263_p11, %p1257_p9 }
  0x4f   : > { %1267 = shalt.err (!%p1264_p12)
}
  0x50   : > { %1112 = dma.hbm_to_vmem [thread:$0]  (!%p1485_p6), %s1798_s2, 2048, %s1491_s9, [#allocation6], %s1405_s19, %s1405_s19, %s1406_s20  }
  0x51   : > { %s1407_s26 = smov [#allocation10]   ;;  %s1268_s29 = scalar_lea.hbm %s1800_s4, 2048 }
  0x52   : > { %s237_s17 = sshll.u32 %s1407_s26, 4  ;;  %p1269_p13 = scmp.ne.s32.totalorder %s1800_s4, %s1268_s29  ;;  %s238_s17 = int_to_ptr.vmem [resolvable:$true] %s237_s17 }
  0x53   : > { %p1275_p5 = scmp.lt.u32.totalorder %s1268_s29, %s1800_s4 }
  0x54   : > { %p1271_p0 = pnand %p1269_p13, %p1501_p8 }
  0x56   : > { %p1272_p2 = pneg %p1271_p0 }
  0x58   : > { %p1277_p7 = pnand %p1275_p5, %p1272_p2 }
  0x5a   : > { %1280 = shalt.err (!%p1277_p7)
}
  0x5b   : > { %s1281_s9 = scalar_lea.vmem %s238_s17, 2048  ;;  %p1289_p11 = scmp.lt.s32.totalorder %s238_s17, %s238_s17 }
  0x5c   : > { %p1282_p9 = scmp.ne.s32.totalorder %s238_s17, %s1281_s9  ;;  %p1290_p12 = scmp.lt.s32.totalorder %s1281_s9, %s1281_s9 }
  0x5e   : > { %p1284_p4 = pnand %p1282_p9, %p1501_p8  ;;  %p1291_p1 = por %p1290_p12, %p1289_p11 }
  0x60   : > { %p1285_p10 = pneg %p1284_p4 }
  0x62   : > { %p1292_p3 = pnand %p1291_p1, %p1285_p10 }
  0x64   : > { %1295 = shalt.err (!%p1292_p3)
}
  0x65   : > { %1118 = dma.hbm_to_vmem [thread:$0]  (!%p1485_p6), %s1800_s4, 2048, %s238_s17, [#allocation9], %s1405_s19, %s1405_s19, %s1406_s20  }
  0x66   : > { %s815_s7 = sadd.s32 4294967294, %s1400_s24   ;;  %s1600_s15 = sadd.s32 1, %s1400_s24  }
  0x67   : > { %s28_s14 = ssub.s32 %s1400_s24, %s1600_s15  ;;  %s31_s16 = sadd.s32 1, %s1396_s23 }
  0x68   : > { %p29_p1 = scmp.eq.s32.totalorder %s28_s14, 0  ;;  %p38_p3 = scmp.ne.s32.totalorder %s1396_s23, %s1392_s22 }
  0x69   : > { %p39_p8 = scmp.eq.s32.totalorder %s1400_s24, 0  ;;  %p44_p13 = scmp.ne.s32.totalorder %s1392_s22, %s1388_s21 }
  0x6a   : > { %s1611_s26 = scalar_select %p29_p1, %s1396_s23, %s31_s16  }
  0x6b   : > { %p1613_p0 = por %p39_p8, %p38_p3  ;;  %p1810_p2 = scmp.eq.s32.totalorder %s1469_s27, 0 }
  0x6c   : > { %p173_p5 = scmp.eq.s32.totalorder %s1469_s27, 1  ;;  %p179_p7 = scmp.eq.s32.totalorder %s815_s7, 1 }
  0x6d   : > { %p1619_p6 = por %p1810_p2, %p44_p13  ;;  %p1131_p9 = scmp.lt.s32.totalorder %s1400_s24, 2 }
  0x6e   : > { %s254_s20 = sand.u32 1, %s1396_s23   ;;  %p1626_p4 = por %p173_p5, %p38_p3 }
  0x6f   : > { %p1630_p10 = por %p179_p7, %p44_p13  ;;  %s822_s29 = sshll.u32 %s254_s20, 3 }
  0x70   : > { %s1812_s17 = scalar_select %p1626_p4, 1, 0 }
  0x71   : > { %s1813_s25 = scalar_select %p1630_p10, 1, 0 }
  0x72   : > { %s823_s8 = sshll.u32 %s1400_s24, 7  ;;  %s258_s9 = scalar_lea.vmem [#allocation2], %s822_s29 }
  0x73   : > { %s1638_s12 = scalar_lea.hbm %s1796_s0, %s823_s8  ;;  %s265_s13 = sshll.u32 %s258_s9, 4  ;;  %s1640_s13 = int_to_ptr.vmem [resolvable:$true] %s265_s13 }
  0x74   : > { %p1644_p11 = pnand %p1131_p9, %p1613_p0  ;;  %s255_s7 = scalar_lea.sflag [#allocation3], %s254_s20 }
  0x75   : > { %s1296_s14 = scalar_lea.hbm %s1638_s12, 128  ;;  %s1301_s8 = scalar_lea.hbm %s1796_s0, 256 }
  0x76   : > { %p1297_p12 = scmp.ne.s32.totalorder %s1638_s12, %s1296_s14  ;;  %p1298_p1 = pneg %p1644_p11 }
  0x77   : > { %p1302_p13 = scmp.lt.u32.totalorder %s1638_s12, %s1796_s0  ;;  %p1303_p0 = scmp.lt.u32.totalorder %s1301_s8, %s1296_s14 }
  0x78   : > { %p1299_p3 = pnand %p1298_p1, %p1297_p12  ;;  %p1305_p5 = scmp.lt.u32.totalorder %s1296_s14, %s1638_s12 }
  0x79   : > { %p1304_p2 = por %p1303_p0, %p1302_p13 }
  0x7a   : > { %p1300_p8 = pneg %p1299_p3 }
  0x7b   : > { %p1306_p7 = por %p1305_p5, %p1304_p2 }
  0x7d   : > { %p1307_p9 = pnand %p1306_p7, %p1300_p8 }
  0x7f   : > { %1310 = shalt.err (!%p1307_p9)
}
  0x80   : > { %s1311_s20 = scalar_lea.vmem %s1640_s13, 128  ;;  %s1408_s11 = smov [#allocation2]  }
  0x81   : > { %p1312_p12 = scmp.ne.s32.totalorder %s1640_s13, %s1311_s20  ;;  %s1316_s9 = sshll.u32 %s1408_s11, 4  ;;  %s1317_s9 = int_to_ptr.vmem [resolvable:$false] %s1316_s9 }
  0x82   : > { %s1318_s16 = scalar_lea.vmem %s1317_s9, 256  ;;  %p1319_p4 = scmp.lt.s32.totalorder %s1640_s13, %s1317_s9 }
  0x83   : > { %p1314_p3 = pnand %p1312_p12, %p1298_p1  ;;  %p1320_p13 = scmp.lt.s32.totalorder %s1318_s16, %s1311_s20 }
  0x85   : > { %p1315_p10 = pneg %p1314_p3  ;;  %p1321_p0 = por %p1320_p13, %p1319_p4 }
  0x87   : > { %p1322_p2 = pnand %p1321_p0, %p1315_p10 }
  0x89   : > { %1325 = shalt.err (!%p1322_p2)
}
  0x8a   : > { %1122 = dma.hbm_to_vmem [thread:$0]  (!%p1644_p11), %s1638_s12, 128, %s1640_s13, %s255_s7  }
  0x8b   : > { %p1815_p8 = scmp.ne.s32.totalorder %s1806_s28, 0 }
  0x8c   : > { %s1676_s14 = sand.u32 (!%p1815_p8), 1, %s1392_s22  }
  0x8d   : > { %274 = sbr.rel (%p1815_p8) target bundleno = 1086 (0x43e), region = 44  ;;  %s825_s29 = sshll.u32 (!%p1815_p8), %s1676_s14, 3 }
  0x8e   : > { %s277_s8 = scalar_lea.sflag (!%p1815_p8), [#allocation3], %s1676_s14  ;;  %s1682_s18 = scalar_lea.vmem (!%p1815_p8), [#allocation2], %s825_s29 }
  0x94   : > { %1371 = dma.done.wait (%p1619_p6), %s277_s8, 128  }
  0x95   : > { %1373 = vsyncadd (%p1619_p6), %s277_s8, 4294967168  ;;  %p1816_p4 = scmp.eq.s32.totalorder %s1469_s27, 0 }
  0x97   : > { %1375 = dma.done.wait (%p1816_p4), [#allocation6], 2560   ;;  %p1817_p10 = pmov %p1816_p4 }
  0x98   : > { %p1818_p11 = pmov %p1816_p4 }
  0x99   : > { %1377 = vsyncadd (%p1817_p10), [#allocation6], 4294964736 }
  0x9a   : > { %1379 = dma.done.wait (%p1818_p11), [#allocation9], 4096   ;;  %p1819_p1 = pmov %p1816_p4 }
  0x9b   : > { %v1409_v0 = vmov 0.0|0.0   ;;  %vm1410_vm0 = vmmov 0   ;;  %v1411_v1 = vmov 0.0   ;;  %v327_v2 = vld [vmem:[#allocation5] sm:$0xff]  ;;  %v328_v3 = vld [vmem:[#allocation5 + $0x8] sm:$0xff]  ;;  %v329_v4 = vld [vmem:[#allocation5 + $0x10] sm:$0xff]  ;;  %v331_v42 = vlaneseq }
  0x9c   : > { %1381 = vsyncadd (%p1819_p1), [#allocation9], 4294963200  ;;  %1008 = vmatprep.subr.bf16.mxu0 %v1409_v0  ;;  %900 = vmatprep.mubr.msk.f32.mxu0 %vm1410_vm0, %v1411_v1  ;;  %v1009_v5 = vpack.c.bf16 %v328_v3, %v327_v2  ;;  %v330_v6 = vld [vmem:[#allocation5 + $0x18] sm:$0xff]  ;;  %v413_v7 = vld [vmem:[#allocation7] sm:$0xff]  ;;  %vm335_vm1 = vcmask 261120   ;;  %s833_s12 = sshll.u32 %s1469_s27, 7 }
  0x9d   : > { %1014 = vmatprep.subr.bf16.mxu1 %v1409_v0  ;;  %935 = vmatprep.mubr.msk.f32.mxu1 %vm1410_vm0, %v1411_v1  ;;  %v414_v8 = vld [vmem:[#allocation7 + $0x8] sm:$0xff]  ;;  %v415_v9 = vld [vmem:[#allocation7 + $0x10] sm:$0xff]  ;;  %v416_v10 = vld [vmem:[#allocation7 + $0x18] sm:$0xff]  ;;  %v1012_v11 = vpack.c.bf16 %v330_v6, %v329_v4  ;;  %v1718_v43 = vshrl.u32 %v331_v42, 7  ;;  %s324_s13 = scalar_lea.vmem [#allocation11], %s825_s29  ;;  %vm691_vm2 = vcmask 130048   ;;  %s1752_s20 = scalar_lea.hbm %s1802_s6, %s833_s12 }
  0x9e   : > { %1010 = vmatpush3.bf16.msra.mxu0 %v1009_v5  ;;  %v1015_v12 = vpack.c.bf16 %v414_v8, %v413_v7  ;;  %v1018_v13 = vpack.c.bf16 %v416_v10, %v415_v9  ;;  %v417_v14 = vld [vmem:[#allocation7 + $0x20] sm:$0xff]  ;;  %v418_v15 = vld [vmem:[#allocation7 + $0x28] sm:$0xff]  ;;  %v326_v16 = vld [vmem:[%s1682_s18] sm:$0xff]  ;;  %s707_s30 = sshll.u32 %s324_s13, 4  ;;  %s694_s11 = scalar_lea.sflag [#allocation4], %s1676_s14  ;;  %s1754_s30 = int_to_ptr.vmem [resolvable:$true] %s707_s30 }
  0x9f   : > { %1011 = vmatprep.subr.bf16.mxu0 %v1409_v0  ;;  %v1021_v17 = vpack.c.bf16 %v418_v15, %v417_v14  ;;  %v419_v18 = vld [vmem:[#allocation7 + $0x30] sm:$0xff]  ;;  %v420_v19 = vld [vmem:[#allocation7 + $0x38] sm:$0xff]  ;;  %v421_v21 = vld [vmem:[#allocation7 + $0x40] sm:$0xff]  ;;  %v333_v44 = vsub.s32 0, %v1718_v43  ;;  %v431_v15 = vsub.s32 1, %v1718_v43  ;;  %s1326_s27 = scalar_lea.vmem %s1754_s30, 128 }
  0xa0   : > { %1016 = vmatpush3.bf16.msra.mxu1 %v1015_v12  ;;  %v1024_v20 = vpack.c.bf16 %v420_v19, %v419_v18  ;;  %v422_v22 = vld [vmem:[#allocation7 + $0x48] sm:$0xff]  ;;  %v423_v24 = vld [vmem:[#allocation7 + $0x50] sm:$0xff]  ;;  %v424_v25 = vld [vmem:[#allocation7 + $0x58] sm:$0xff]  ;;  %p1327_p6 = scmp.ne.s32.totalorder %s1754_s30, %s1326_s27  ;;  %p1820_p5 = scmp.ne.s32.totalorder %s1812_s17, 0 }
  0xa1   : > { %1017 = vmatprep.subr.bf16.mxu1 %v1409_v0  ;;  %v1027_v23 = vpack.c.bf16 %v422_v22, %v421_v21  ;;  %v1030_v26 = vpack.c.bf16 %v424_v25, %v423_v24  ;;  %v425_v27 = vld [vmem:[#allocation7 + $0x60] sm:$0xff]  ;;  %v426_v28 = vld [vmem:[#allocation7 + $0x68] sm:$0xff]  ;;  %v427_v30 = vld [vmem:[#allocation7 + $0x70] sm:$0xff]  ;;  %s1412_s9 = smov [#allocation11]  }
  0xa2   : > { %1013 = vmatpush3.bf16.msra.mxu0 %v1012_v11  ;;  %v1033_v29 = vpack.c.bf16 %v426_v28, %v425_v27  ;;  %v428_v31 = vld [vmem:[#allocation7 + $0x78] sm:$0xff]  ;;  %v507_v33 = vld [vmem:[#allocation8] sm:$0xff]  ;;  %v508_v34 = vld [vmem:[#allocation8 + $0x8] sm:$0xff]  ;;  %p1328_p7 = pnand %p1327_p6, %p1820_p5  ;;  %s1330_s16 = sshll.u32 %s1412_s9, 4  ;;  %s1331_s16 = int_to_ptr.vmem [resolvable:$false] %s1330_s16 }
  0xa3   : > { %1038 = vmatprep.subr.bf16.mxu0 %v1409_v0  ;;  %v1036_v32 = vpack.c.bf16 %v428_v31, %v427_v30  ;;  %v509_v35 = vld [vmem:[#allocation8 + $0x10] sm:$0xff]  ;;  %v1039_v36 = vpack.c.bf16 %v508_v34, %v507_v33  ;;  %v510_v37 = vld [vmem:[#allocation8 + $0x18] sm:$0xff]  ;;  %v511_v39 = vld [vmem:[#allocation8 + $0x20] sm:$0xff]  ;;  %s1332_s29 = scalar_lea.vmem %s1331_s16, 256  ;;  %p1333_p12 = scmp.lt.s32.totalorder %s1754_s30, %s1331_s16 }
  0xa4   : > { %1019 = vmatpush3.bf16.msra.mxu1 %v1018_v13  ;;  %v1042_v38 = vpack.c.bf16 %v510_v37, %v509_v35  ;;  %v512_v40 = vld [vmem:[#allocation8 + $0x28] sm:$0xff]  ;;  %v1724_v45 = vld [vmem:[%s1801_s5] sm:$0xf]  ;;  %v514_v55 = vld [vmem:[#allocation8 + $0x38] sm:$0xff]  ;;  %p1329_p9 = pneg %p1328_p7  ;;  %p1334_p3 = scmp.lt.s32.totalorder %s1332_s29, %s1326_s27 }
  0xa5   : > { %901 = vmatmul.mubr.msk.f32.vlgmr.msra.gmra.mrb[0].mxu0 %vm335_vm1, %v326_v16  ;;  %1020 = vmatprep.subr.bf16.mxu1 %v1409_v0  ;;  %v1045_v41 = vpack.c.bf16 %v512_v40, %v511_v39  ;;  %v334_v46 = vrot.slane %v1724_v45, %v333_v44  ;;  %v513_v54 = vld [vmem:[#allocation8 + $0x30] sm:$0xff]  ;;  %v515_v57 = vld [vmem:[#allocation8 + $0x40] sm:$0xff]  ;;  %v516_v58 = vld [vmem:[#allocation8 + $0x48] sm:$0xff]  ;;  %v432_v16 = vrot.slane %v1724_v45, %v431_v15  ;;  %v525_v39 = vsub.s32 2, %v1718_v43 }
  0xa6   : > { %970 = vmatprep.mubr.msk.f32.mxu0 %vm1410_vm0, %v1411_v1  ;;  %1040 = vmatpush3.bf16.msra.mxu0 %v1039_v36  ;;  %v1048_v56 = vpack.c.bf16 %v514_v55, %v513_v54  ;;  %v1051_v59 = vpack.c.bf16 %v516_v58, %v515_v57  ;;  %v517_v60 = vld [vmem:[#allocation8 + $0x50] sm:$0xff]  ;;  %v518_v61 = vld [vmem:[#allocation8 + $0x58] sm:$0xff]  ;;  %v519_v63 = vld [vmem:[#allocation8 + $0x60] sm:$0xff]  ;;  %p1335_p13 = por %p1334_p3, %p1333_p12 }
  0xa7   : > { %1041 = vmatprep.subr.bf16.mxu0 %v1409_v0  ;;  %v1054_v62 = vpack.c.bf16 %v518_v61, %v517_v60  ;;  %v521_v3 = vld [vmem:[#allocation8 + $0x70] sm:$0xff]  ;;  %v522_v4 = vld [vmem:[#allocation8 + $0x78] sm:$0xff]  ;;  %v601_v6 = vld [vmem:[#allocation10] sm:$0xff]  ;;  %v526_v40 = vrot.slane %v1724_v45, %v525_v39 }
  0xa8   : > { %1022 = vmatpush3.bf16.msra.mxu1 %v1021_v17  ;;  %v1060_v5 = vpack.c.bf16 %v522_v4, %v521_v3  ;;  %v602_v7 = vld [vmem:[#allocation10 + $0x8] sm:$0xff]  ;;  %v603_v8 = vld [vmem:[#allocation10 + $0x10] sm:$0xff]  ;;  %v604_v10 = vld [vmem:[#allocation10 + $0x18] sm:$0xff]  ;;  %p1336_p0 = pnand %p1335_p13, %p1329_p9 }
  0xa9   : > { %1023 = vmatprep.subr.bf16.mxu1 %v1409_v0  ;;  %v1063_v9 = vpack.c.bf16 %v602_v7, %v601_v6  ;;  %v1066_v11 = vpack.c.bf16 %v604_v10, %v603_v8  ;;  %v605_v12 = vld [vmem:[#allocation10 + $0x20] sm:$0xff]  ;;  %v606_v13 = vld [vmem:[#allocation10 + $0x28] sm:$0xff]  ;;  %v607_v24 = vld [vmem:[#allocation10 + $0x30] sm:$0xff] }
  0xaa   : > { %1043 = vmatpush3.bf16.msra.mxu0 %v1042_v38  ;;  %v1069_v14 = vpack.c.bf16 %v606_v13, %v605_v12  ;;  %v608_v25 = vld [vmem:[#allocation10 + $0x38] sm:$0xff]  ;;  %v609_v27 = vld [vmem:[#allocation10 + $0x40] sm:$0xff]  ;;  %v610_v28 = vld [vmem:[#allocation10 + $0x48] sm:$0xff] }
  0xab   : > { %1044 = vmatprep.subr.bf16.mxu0 %v1409_v0  ;;  %v611_v30 = vld [vmem:[#allocation10 + $0x50] sm:$0xff]  ;;  %v612_v31 = vld [vmem:[#allocation10 + $0x58] sm:$0xff]  ;;  %v613_v33 = vld [vmem:[#allocation10 + $0x60] sm:$0xff] }
  0xac   : > { %1025 = vmatpush3.bf16.msra.mxu1 %v1024_v20  ;;  %v614_v34 = vld [vmem:[#allocation10 + $0x68] sm:$0xff]  ;;  %v615_v36 = vld [vmem:[#allocation10 + $0x70] sm:$0xff]  ;;  %v616_v37 = vld [vmem:[#allocation10 + $0x78] sm:$0xff] }
  0xad   : > { %1026 = vmatprep.subr.bf16.mxu1 %v1409_v0  ;;  %v1081_v35 = vpack.c.bf16 %v614_v34, %v613_v33  ;;  %v1084_v38 = vpack.c.bf16 %v616_v37, %v615_v36 }
  0xae   : > { %1046 = vmatpush3.bf16.msra.mxu0 %v1045_v41 }
  0xaf   : > { %1047 = vmatprep.subr.bf16.mxu0 %v1409_v0 }
  0xb0   : > { %1028 = vmatpush3.bf16.msra.mxu1 %v1027_v23 }
  0xb1   : > { %1029 = vmatprep.subr.bf16.mxu1 %v1409_v0 }
  0xb2   : > { %1049 = vmatpush3.bf16.msra.mxu0 %v1048_v56 }
  0xb3   : > { %1050 = vmatprep.subr.bf16.mxu0 %v1409_v0 }
  0xb4   : > { %1031 = vmatpush3.bf16.msra.mxu1 %v1030_v26  ;;  %v1072_v26 = vpack.c.bf16 %v608_v25, %v607_v24 }
  0xb5   : > { %1032 = vmatprep.subr.bf16.mxu1 %v1409_v0 }
  0xb6   : > { %1052 = vmatpush3.bf16.msra.mxu0 %v1051_v59 }
  0xb7   : > { %1053 = vmatprep.subr.bf16.mxu0 %v1409_v0 }
  0xb8   : > { %1034 = vmatpush3.bf16.msra.mxu1 %v1033_v29  ;;  %v1075_v29 = vpack.c.bf16 %v610_v28, %v609_v27 }
  0xb9   : > { %1035 = vmatprep.subr.bf16.mxu1 %v1409_v0 }
  0xba   : > { %1055 = vmatpush3.bf16.msra.mxu0 %v1054_v62 }
  0xbb   : > { %1056 = vmatprep.subr.bf16.mxu0 %v1409_v0 }
  0xbc   : > { %1037 = vmatpush3.bf16.msra.mxu1 %v1036_v32  ;;  %v1078_v32 = vpack.c.bf16 %v612_v31, %v611_v30 }
  0xbd   : > { %1062 = vmatprep.subr.bf16.mxu1 %v1409_v0 }
 0x178   : > { %v405_v47 = vpop.f32.mrb[0].mxu0 }
 0x179   : > { %v406_v48 = vadd.f32 %v405_v47, %v334_v46  ;;  %v902_v49 = vpop.f32.mrb[1].mxu0 }
 0x17b   : > { %v409_v50 = vmul.f32 0.5, %v406_v48 }
 0x17d   : > { %1178 = vtanh.f32 %v409_v50 }
 0x187   : > { %v1179_v51 = vpop.eup %1178 }
 0x188   : > { %v411_v52 = vadd.f32 1.0, %v1179_v51 }
 0x18a   : > { %v412_v53 = vmul.f32 0.5, %v411_v52 }
 0x18c   : > { %936 = vmatmul.mubr.f32.vlgmr.msra.gmra.mrb[0].mxu1 %v412_v53 }
 0x18d   : > { %1005 = vmatprep.mubr.msk.f32.mxu1 %vm1410_vm0, %v1411_v1  ;;  %v520_v1 = vld [vmem:[#allocation8 + $0x68] sm:$0xff]  ;;  %1064 = vmatpush3.bf16.msra.mxu1 %v1063_v9 }
 0x18e   : > { %v1057_v2 = vpack.c.bf16 %v520_v1, %v519_v63  ;;  %1065 = vmatprep.subr.bf16.mxu1 %v1409_v0 }
 0x190   : > { %1058 = vmatpush3.bf16.msra.mxu0 %v1057_v2 }
 0x191   : > { %1059 = vmatprep.subr.bf16.mxu0 %v1409_v0  ;;  %1067 = vmatpush3.bf16.msra.mxu1 %v1066_v11 }
 0x192   : > { %1068 = vmatprep.subr.bf16.mxu1 %v1409_v0 }
 0x194   : > { %1061 = vmatpush3.bf16.msra.mxu0 %v1060_v5 }
 0x195   : > { %1070 = vmatpush3.bf16.msra.mxu1 %v1069_v14 }
 0x196   : > { %1071 = vmatprep.subr.bf16.mxu1 %v1409_v0 }
 0x199   : > { %1073 = vmatpush3.bf16.msra.mxu1 %v1072_v26 }
 0x19a   : > { %1074 = vmatprep.subr.bf16.mxu1 %v1409_v0 }
 0x19d   : > { %1076 = vmatpush3.bf16.msra.mxu1 %v1075_v29 }
 0x19e   : > { %1077 = vmatprep.subr.bf16.mxu1 %v1409_v0 }
 0x1a1   : > { %1079 = vmatpush3.bf16.msra.mxu1 %v1078_v32 }
 0x1a2   : > { %1080 = vmatprep.subr.bf16.mxu1 %v1409_v0 }
 0x1a5   : > { %1082 = vmatpush3.bf16.msra.mxu1 %v1081_v35 }
 0x1a6   : > { %1083 = vmatprep.subr.bf16.mxu1 %v1409_v0  ;;  %v619_v0 = vsub.s32 3, %v1718_v43 }
 0x1a8   : > { %v620_v50 = vrot.slane %v1724_v45, %v619_v0 }
 0x1a9   : > { %1085 = vmatpush3.bf16.msra.mxu1 %v1084_v38 }
 0x25f   : > { %v499_v17 = vpop.f32.mrb[0].mxu1 }
 0x260   : > { %v500_v18 = vadd.f32 %v499_v17, %v432_v16  ;;  %v937_v19 = vpop.f32.mrb[1].mxu1 }
 0x262   : > { %v503_v20 = vmul.f32 0.5, %v500_v18 }
 0x264   : > { %1180 = vtanh.f32 %v503_v20 }
 0x26e   : > { %v1181_v21 = vpop.eup %1180 }
 0x26f   : > { %v505_v22 = vadd.f32 1.0, %v1181_v21 }
 0x271   : > { %v506_v23 = vmul.f32 0.5, %v505_v22 }
 0x273   : > { %971 = vmatmul.mubr.f32.vlgmr.msra.gmra.mrb[2].mxu0 %v506_v23 }
 0x346   : > { %v593_v41 = vpop.f32.mrb[2].mxu0 }
 0x347   : > { %v594_v42 = vadd.f32 %v593_v41, %v526_v40  ;;  %v972_v44 = vpop.f32.mrb[3].mxu0 }
 0x349   : > { %v597_v46 = vmul.f32 0.5, %v594_v42 }
 0x34b   : > { %1182 = vtanh.f32 %v597_v46 }
 0x355   : > { %v1183_v47 = vpop.eup %1182 }
 0x356   : > { %v599_v48 = vadd.f32 1.0, %v1183_v47 }
 0x358   : > { %v600_v49 = vmul.f32 0.5, %v599_v48 }
 0x35a   : > { %1006 = vmatmul.mubr.f32.vlgmr.msra.gmra.mrb[2].mxu1 %v600_v49 }
 0x42d   : > { %v687_v51 = vpop.f32.mrb[2].mxu1 }
 0x42e   : > { %v688_v52 = vadd.f32 %v687_v51, %v620_v50  ;;  %v1007_v53 = vpop.f32.mrb[3].mxu1 }
 0x430   : > { %692 = vst.msk [vmem:[%s324_s13] sm:$0xff] %vm691_vm2, %v688_v52 }
 0x431   : > { %1339 = shalt.err (!%p1336_p0)
}
 0x432   : > { %s1340_s14 = scalar_lea.hbm %s1752_s20, 128  ;;  %s1344_s28 = scalar_lea.hbm %s1802_s6, 256 }
 0x433   : > { %p1341_p2 = scmp.ne.s32.totalorder %s1752_s20, %s1340_s14  ;;  %p1345_p10 = scmp.lt.u32.totalorder %s1752_s20, %s1802_s6 }
 0x434   : > { %p1346_p11 = scmp.lt.u32.totalorder %s1344_s28, %s1340_s14  ;;  %p1348_p6 = scmp.lt.u32.totalorder %s1340_s14, %s1752_s20 }
 0x435   : > { %p1342_p8 = pnand %p1341_p2, %p1820_p5 }
 0x436   : > { %p1347_p1 = por %p1346_p11, %p1345_p10 }
 0x437   : > { %p1343_p4 = pneg %p1342_p8 }
 0x438   : > { %p1349_p7 = por %p1348_p6, %p1347_p1 }
 0x43a   : > { %p1350_p9 = pnand %p1349_p7, %p1343_p4 }
 0x43c   : > { %1353 = shalt.err (!%p1350_p9)
}
 0x43d   : > { %1104 = dma.vmem_to_hbm [thread:$0]  (%p1820_p5), %s1754_s30, 128, %s1752_s20, %s694_s11  }
 0x43e PF: > { %s719_s13 = sand.u32 1, %s1388_s21   ;;  %p1821_p12 = scmp.ne.s32.totalorder %s1813_s25, 0 }
 0x43f   : > { %p1822_p3 = scmp.ge.s32.totalorder %s1400_s24, 2  ;;  %s720_s7 = scalar_lea.sflag [#allocation4], %s719_s13 }
 0x441   : > { %p1124_p13 = pnand %p1822_p3, %p1821_p12 }
 0x443   : > { %1383 = dma.done.wait (!%p1124_p13), %s720_s7, 128  }
 0x444   : > { %1385 = vsyncadd (!%p1124_p13), %s720_s7, 4294967168  ;;  %p21_p0 = scmp.ge.s32.totalorder %s1600_s15, 4   ;;  %s1823_s21 = smov %s1392_s22 }
 0x445   : > { %s1824_s22 = smov %s1396_s23  ;;  %s1825_s23 = smov %s1611_s26 }
 0x446   : > { %s1826_s24 = smov %s1600_s15  ;;  %23 = sbr.rel (!%p21_p0) target bundleno = 7 (0x7), region = 105 }
 0x44d   :  { %725 = vsyncpa [#allocation3], 1 }
 0x44e   :  { %727 = vsyncpa [#allocation3 + $0x1], 1 }
 0x44f   :  { %728 = vsyncpa [#allocation6], 1 }
 0x450   :  { %729 = vsyncpa [#allocation9], 1 }
 0x451   :  { %730 = vsyncpa [#allocation4], 1 }
 0x452   :  { %732 = vsyncpa [#allocation4 + $0x1], 1 }

</bundles_post_ra>
